<compile_context>
chip_gen: v7x
topology: tpu7x:2x2x1
jax: 0.10.0
libtpu: 0.0.40
codegen_flags: <defaults>
</compile_context>

<pallas_src>
import jax
import jax.numpy as jnp
from jax.experimental import pallas as pl
from jax.experimental.pallas import tpu as pltpu


def _round_up(x, m):
    return ((x + m - 1) // m) * m


def _cdiv(a, b):
    return -(-a // b)


def _buffered_spec(shape, index_map, buffers):
    """BlockSpec with an explicit buffer count; falls back to default pipelining."""
    try:
        return pl.BlockSpec(shape, index_map, pipeline_mode=pl.Buffered(buffers))
    except Exception:
        return pl.BlockSpec(shape, index_map)


def _refine_kernel(summ_ref, tar_ref, w_ref, b_ref, out_ref):
    # x = [summ | tar]  (tn, 2D);  W = blockdiag(W1, W2)  (2D, 2D)
    # h = ReLU(x @ W + [b1|b2]);  out = summ + h[:, :D] + h[:, D:]
    summ = summ_ref[...]                                   # f32 residual path
    d = summ.shape[-1]
    x = jnp.concatenate([summ, tar_ref[...]], axis=-1).astype(w_ref.dtype)
    h = jnp.dot(x, w_ref[...], preferred_element_type=jnp.float32) + b_ref[...]
    h = jnp.maximum(h, 0.0)
    out_ref[...] = (summ + h[:, :d] + h[:, d:]).astype(out_ref.dtype)


def _vmem_need_bytes(tn, d, mm_itemsize, row_buffers):
    rows = 3 * row_buffers * tn * d * 4                    # summ, tar, out (pipelined)
    temps = tn * 2 * d * (mm_itemsize + 4) + 2 * tn * 2 * d * 4  # x, h, slice/out temps
    weights = 2 * (2 * d) * (2 * d) * mm_itemsize          # worst-case double-buffered
    biases = 2 * 8 * _round_up(2 * d, 128) * 4             # sublane-padded bias blocks
    return rows + temps + weights + biases


def feature_refiner_mean(msg_from_o, msg_from_s, o_ava_idx, s_ava_idx, tar_feat,
                         w1, b1, w2, b2, *, tile_n=1024,
                         matmul_dtype=jnp.float32, row_buffers=None):
    """FeatureRefiner.forward with apply_method == 'mean'.

    msg_from_o: [No, D], msg_from_s: [Ns, D]
    o_ava_idx:  [No] int32 row indices into tar_feat (assumed unique)
    s_ava_idx:  [Ns] int32 row indices into tar_feat (assumed unique)
    tar_feat:   [N, D]
    w1, w2:     [D, D]  (already transposed: y = x @ w + b)
    b1, b2:     [D]
    matmul_dtype: f32 (exact) or bf16 (faster MXU on v6e/v7x, f32 accumulate)
    row_buffers:  None -> default double buffering; 3 helps on mem-bound v5e.
    """
    N, D = tar_feat.shape
    assert N >= o_ava_idx.shape[0] and N >= s_ava_idx.shape[0]
    out_dtype = tar_feat.dtype
    mm_itemsize = jnp.dtype(matmul_dtype).itemsize
    align = 16 if matmul_dtype == jnp.bfloat16 else 8
    rb = row_buffers if row_buffers is not None else 2

    # ---- balanced row tiling (pad waste < align rows/tile), megacore-aware ----
    num_tiles = max(1, _cdiv(N, tile_n))
    if num_tiles == 1 and N >= 2 * align:        # give both v7x TensorCores work
        num_tiles = 2
    tn = _round_up(_cdiv(N, num_tiles), align)

    # ---- generation-aware VMEM ceiling; shrink tile if it would not fit ----
    try:
        phys_vmem = int(pltpu.get_tpu_info().vmem_capacity_bytes)
    except Exception:
        phys_vmem = 64 << 20                      # conservative (v7x per-core)
    vmem_ceiling = max(phys_vmem - (8 << 20), 16 << 20)
    while _vmem_need_bytes(tn, D, mm_itemsize, rb) + (4 << 20) > vmem_ceiling and tn > align:
        num_tiles *= 2
        tn = _round_up(_cdiv(N, num_tiles), align)
    N_pad = num_tiles * tn

    # ---- build summ directly in the padded buffer (no extra padded HBM copies) ----
    # NOTE: with duplicate indices inside one index array, torch keeps the last
    # write while scatter-add sums; indices are assumed unique (as flagged).
    f32 = jnp.float32
    summ_p = jnp.zeros((N_pad, D), f32)
    summ_p = summ_p.at[o_ava_idx].add(0.5 * msg_from_o.astype(f32))
    summ_p = summ_p.at[s_ava_idx].add(0.5 * msg_from_s.astype(f32))
    tar_p = tar_feat.astype(f32)
    if N_pad != N:
        tar_p = jnp.pad(tar_p, ((0, N_pad - N), (0, 0)))

    # ---- block-diagonal weight fusion: one 2D-K x 2D-N matmul fills the MXU ----
    w_cat = jnp.zeros((2 * D, 2 * D), f32)
    w_cat = w_cat.at[:D, :D].set(w1.astype(f32))
    w_cat = w_cat.at[D:, D:].set(w2.astype(f32))
    w_cat = w_cat.astype(matmul_dtype)
    b_cat = jnp.concatenate([b1, b2]).astype(f32).reshape(1, 2 * D)

    grid = (N_pad // tn,)
    if row_buffers is None:
        row_spec = pl.BlockSpec((tn, D), lambda i: (i, 0))
    else:
        row_spec = _buffered_spec((tn, D), lambda i: (i, 0), row_buffers)
    # grid-invariant: constant index_map + single buffer keeps them resident.
    w_spec = _buffered_spec((2 * D, 2 * D), lambda i: (0, 0), 1)
    b_spec = _buffered_spec((1, 2 * D), lambda i: (0, 0), 1)

    need = _vmem_need_bytes(tn, D, mm_itemsize, rb)
    vmem_limit = int(min(vmem_ceiling, max(need + (4 << 20), 32 << 20)))

    out_p = pl.pallas_call(
        _refine_kernel,
        out_shape=jax.ShapeDtypeStruct((N_pad, D), out_dtype),
        grid_spec=pltpu.PrefetchScalarGridSpec(
            num_scalar_prefetch=0,
            grid=grid,
            in_specs=[row_spec, row_spec, w_spec, b_spec],
            out_specs=row_spec if row_buffers is not None
            else pl.BlockSpec((tn, D), lambda i: (i, 0)),
        ),
        compiler_params=pltpu.CompilerParams(
            dimension_semantics=("parallel",),
            vmem_limit_bytes=vmem_limit,
        ),
    )(summ_p, tar_p, w_cat, b_cat)

    return out_p if N_pad == N else out_p[:N]


def _reference(msg_from_o, msg_from_s, o_ava_idx, s_ava_idx, tar_feat, w1, b1, w2, b2):
    N, D = tar_feat.shape
    padded_o = jnp.zeros((N, D), jnp.float32).at[o_ava_idx].set(msg_from_o)
    padded_s = jnp.zeros((N, D), jnp.float32).at[s_ava_idx].set(msg_from_s)
    summ = (padded_o + padded_s) * 0.5
    hidden = jnp.maximum(summ @ w1 + b1, 0.0) + jnp.maximum(tar_feat @ w2 + b2, 0.0)
    return summ + hidden


def _run_case(key, N, D, No, Ns, tile_n, matmul_dtype=jnp.float32, atol=1e-5, rtol=1e-5):
    k1, k2, k3, k4, k5, k6, k7, k8, k9 = jax.random.split(key, 9)
    tar_feat = jax.random.normal(k1, (N, D), dtype=jnp.float32)
    msg_from_o = jax.random.normal(k2, (No, D), dtype=jnp.float32)
    msg_from_s = jax.random.normal(k3, (Ns, D), dtype=jnp.float32)
    o_ava_idx = jax.random.permutation(k8, N)[:No].astype(jnp.int32)
    s_ava_idx = jax.random.permutation(k9, N)[:Ns].astype(jnp.int32)
    # nn.Linear(feat_size, feat_size) x2, stored as [D_in, D_out].
    w1 = jax.random.normal(k4, (D, D), dtype=jnp.float32) * 0.05
    b1 = jax.random.normal(k5, (D,), dtype=jnp.float32) * 0.05
    w2 = jax.random.normal(k6, (D, D), dtype=jnp.float32) * 0.05
    b2 = jax.random.normal(k7, (D,), dtype=jnp.float32) * 0.05

    out = feature_refiner_mean(msg_from_o, msg_from_s, o_ava_idx, s_ava_idx,
                               tar_feat, w1, b1, w2, b2,
                               tile_n=tile_n, matmul_dtype=matmul_dtype)
    out = jax.block_until_ready(out)
    ref = _reference(msg_from_o, msg_from_s, o_ava_idx, s_ava_idx,
                     tar_feat, w1, b1, w2, b2)
    assert out.shape == (N, D) and out.dtype == jnp.float32
    assert jnp.allclose(out, ref, atol=atol, rtol=rtol), \
        f"mismatch: max abs err {jnp.max(jnp.abs(out - ref))}"


if __name__ == "__main__":
    key = jax.random.PRNGKey(0)
    k_a, k_b, k_c, k_d = jax.random.split(key, 4)

    # Small module-consistent shape (D = MLP_HEAD_DIM); full-extent-D (no col pad).
    _run_case(k_a, N=8, D=32, No=5, Ns=6, tile_n=1024)
    # Balanced multi-tile grid (grid=3, pad waste < 8 rows/tile), lane-dense D.
    _run_case(k_b, N=300, D=128, No=120, Ns=90, tile_n=128)
    # Megacore-forced 2-way split when one tile would otherwise cover N.
    _run_case(k_c, N=300, D=128, No=120, Ns=90, tile_n=1024)
    # bf16 MXU operands (f32 accumulate / residual) with relaxed tolerance.
    _run_case(k_d, N=300, D=128, No=120, Ns=90, tile_n=512,
              matmul_dtype=jnp.bfloat16, atol=3e-2, rtol=3e-2)

    # TODO(synk): the 'two_step_fc' branch (in-place scatter-update of tar_feat rows)
    # and the (disabled-by-default) dropout in MassageApply are not wired here.
    print("KERNEL_OK")
</pallas_src>

<mosaic_0001>
module attributes {stable_mosaic.version = 11 : i64} {
  func.func @_refine_kernel(%arg0: i32, %arg1: memref<8x32xf32, #tpu.memory_space<vmem>>, %arg2: memref<8x32xf32, #tpu.memory_space<vmem>>, %arg3: memref<64x64xf32, #tpu.memory_space<vmem>>, %arg4: memref<1x64xf32, #tpu.memory_space<vmem>>, %arg5: memref<8x32xf32, #tpu.memory_space<vmem>>) attributes {dimension_semantics = [#tpu.dimension_semantics<parallel>], iteration_bounds = array<i64: 1>, scalar_prefetch = 0 : i64, scratch_operands = 0 : i64, tpu.core_type = #tpu.core_type<tc>, window_params = [{transform_indices = @transform_0, window_bounds = array<i64: 8, 32>}, {transform_indices = @transform_1, window_bounds = array<i64: 8, 32>}, {pipeline_mode = #tpu.pipeline_mode<synchronous>, transform_indices = @transform_2, window_bounds = array<i64: 64, 64>}, {pipeline_mode = #tpu.pipeline_mode<synchronous>, transform_indices = @transform_3, window_bounds = array<i64: 1, 64>}, {transform_indices = @transform_4, window_bounds = array<i64: 8, 32>}]} {
    %c0 = arith.constant 0 : index
    %c0_0 = arith.constant 0 : index
    %0 = vector.load %arg1[%c0, %c0_0] : memref<8x32xf32, #tpu.memory_space<vmem>>, vector<8x32xf32>
    %c0_1 = arith.constant 0 : index
    %c0_2 = arith.constant 0 : index
    %1 = vector.load %arg2[%c0_1, %c0_2] : memref<8x32xf32, #tpu.memory_space<vmem>>, vector<8x32xf32>
    %2 = tpu.concatenate %0, %1 in 1 : vector<8x32xf32>, vector<8x32xf32> -> vector<8x64xf32>
    %c0_3 = arith.constant 0 : index
    %c0_4 = arith.constant 0 : index
    %3 = vector.load %arg3[%c0_3, %c0_4] : memref<64x64xf32, #tpu.memory_space<vmem>>, vector<64x64xf32>
    %cst = arith.constant dense<0.000000e+00> : vector<8x64xf32>
    %4 = tpu.matmul %2, %3, %cst {dimension_numbers = #tpu.dot_dimension_numbers<[1], [0], [0], [1], [0, 0, 1, 1], [], []>} : vector<8x64xf32>, vector<64x64xf32>, vector<8x64xf32> -> vector<8x64xf32>
    %c0_5 = arith.constant 0 : index
    %c0_6 = arith.constant 0 : index
    %5 = vector.load %arg4[%c0_5, %c0_6] : memref<1x64xf32, #tpu.memory_space<vmem>>, vector<1x64xf32>
    %6 = vector.broadcast %5 : vector<1x64xf32> to vector<8x64xf32>
    %7 = arith.addf %4, %6 : vector<8x64xf32>
    %cst_7 = arith.constant 0.000000e+00 : f32
    %8 = vector.broadcast %cst_7 : f32 to vector<8x64xf32>
    %9 = arith.maximumf %7, %8 : vector<8x64xf32>
    %10 = vector.extract_strided_slice %9 {offsets = [0, 0], sizes = [8, 32], strides = [1, 1]} : vector<8x64xf32> to vector<8x32xf32>
    %11 = arith.addf %0, %10 : vector<8x32xf32>
    %12 = vector.extract_strided_slice %9 {offsets = [0, 32], sizes = [8, 32], strides = [1, 1]} : vector<8x64xf32> to vector<8x32xf32>
    %13 = arith.addf %11, %12 : vector<8x32xf32>
    %c0_8 = arith.constant 0 : index
    %c0_9 = arith.constant 0 : index
    %14 = vector.load %arg5[%c0_8, %c0_9] : memref<8x32xf32, #tpu.memory_space<vmem>>, vector<8x32xf32>
    tpu.vector_store %arg5[%c0_8, %c0_9], %13 {strides = array<i32>} : memref<8x32xf32, #tpu.memory_space<vmem>>, vector<8x32xf32>,
    return
  }
  func.func @transform_0(%arg0: i32) -> (i32, i32) {
    %c0_i32 = arith.constant 0 : i32
    %c0_i32_0 = arith.constant 0 : i32
    return %arg0, %c0_i32 : i32, i32
  }
  func.func @transform_1(%arg0: i32) -> (i32, i32) {
    %c0_i32 = arith.constant 0 : i32
    %c0_i32_0 = arith.constant 0 : i32
    return %arg0, %c0_i32 : i32, i32
  }
  func.func @transform_2(%arg0: i32) -> (i32, i32) {
    %c0_i32 = arith.constant 0 : i32
    %c0_i32_0 = arith.constant 0 : i32
    %c0_i32_1 = arith.constant 0 : i32
    return %c0_i32, %c0_i32_0 : i32, i32
  }
  func.func @transform_3(%arg0: i32) -> (i32, i32) {
    %c0_i32 = arith.constant 0 : i32
    %c0_i32_0 = arith.constant 0 : i32
    %c0_i32_1 = arith.constant 0 : i32
    return %c0_i32, %c0_i32_0 : i32, i32
  }
  func.func @transform_4(%arg0: i32) -> (i32, i32) {
    %c0_i32 = arith.constant 0 : i32
    %c0_i32_0 = arith.constant 0 : i32
    return %arg0, %c0_i32 : i32, i32
  }
}

</mosaic_0001>

<bundles_post_ra>
// kernel: tpu_custom_call.1
= control target key start
LH: loop header
LB: loop body
LE: loop exit
PB: predicated region body
PF: predicated region fallthrough
CT: control target
= control target key end

     0   :  { %9 = vsyncpa [#allocation3], 0  ;;  %s412_s0 = inlined_call_operand.hbm [shape: f32[8,32], index: 0, kind: input, shape index: {}]   ;;  %s413_s1 = inlined_call_operand.hbm [shape: f32[8,32], index: 1, kind: input, shape index: {}]   ;;  %s414_s2 = inlined_call_operand.hbm [shape: f32[64,64], index: 2, kind: input, shape index: {}]   ;;  %s415_s3 = inlined_call_operand.vmem [shape: f32[1,64], index: 3, kind: input, shape index: {}]   ;;  %s416_s4 = inlined_call_operand.hbm [shape: f32[8,32], index: 4, kind: output, shape index: {}]  }
   0x1   :  { %10 = vsyncpa [#allocation6], 0 }
   0x2   :  { %11 = vsyncpa [#allocation4], 0  ;;  %s323_s15 = smov [#allocation5]   ;;  %s324_s17 = smov [#allocation2]  }
   0x3   :  { %s28_s16 = sshll.u32 %s323_s15, 4  ;;  %s18_s18 = sshll.u32 %s324_s17, 4  ;;  %s29_s16 = int_to_ptr.vmem [resolvable:$true] %s28_s16  ;;  %s19_s18 = int_to_ptr.vmem [resolvable:$true] %s18_s18 }
   0x4   :  { %s229_s21 = scalar_lea.hbm %s413_s1, 128 }
   0x5   :  { %p230_p0 = scmp.ne.s32.totalorder %s413_s1, %s229_s21  ;;  %p233_p1 = scmp.lt.u32.totalorder %s229_s21, %s413_s1 }
   0x7   :  { %p235_p2 = pnand %p233_p1, %p230_p0 }
   0x9   :  { %238 = shalt.err (!%p235_p2)
}
   0xa   :  { %s239_s26 = scalar_lea.vmem %s29_s16, 128  ;;  %p244_p4 = scmp.lt.s32.totalorder %s29_s16, %s29_s16 }
   0xb   :  { %p240_p3 = scmp.ne.s32.totalorder %s29_s16, %s239_s26  ;;  %p245_p5 = scmp.lt.s32.totalorder %s239_s26, %s239_s26 }
   0xd   :  { %p246_p6 = por %p245_p5, %p244_p4 }
   0xf   :  { %p247_p7 = pnand %p246_p6, %p240_p3 }
  0x11   :  { %250 = shalt.err (!%p247_p7)
}
  0x12   :  { %31 = dma.hbm_to_vmem [thread:$0]  %s413_s1, 128, %s29_s16, [#allocation6]  }
  0x13   :  { %s251_s5 = scalar_lea.hbm %s412_s0, 128 }
  0x14   :  { %p252_p8 = scmp.ne.s32.totalorder %s412_s0, %s251_s5  ;;  %p255_p9 = scmp.lt.u32.totalorder %s251_s5, %s412_s0 }
  0x16   :  { %p257_p10 = pnand %p255_p9, %p252_p8 }
  0x18   :  { %260 = shalt.err (!%p257_p10)
}
  0x19   :  { %s261_s10 = scalar_lea.vmem %s19_s18, 128  ;;  %p266_p12 = scmp.lt.s32.totalorder %s19_s18, %s19_s18 }
  0x1a   :  { %p262_p11 = scmp.ne.s32.totalorder %s19_s18, %s261_s10  ;;  %p267_p13 = scmp.lt.s32.totalorder %s261_s10, %s261_s10 }
  0x1c   :  { %p268_p0 = por %p267_p13, %p266_p12 }
  0x1e   :  { %p269_p1 = pnand %p268_p0, %p262_p11 }
  0x20   :  { %272 = shalt.err (!%p269_p1)
}
  0x21   :  { %21 = dma.hbm_to_vmem [thread:$0]  %s412_s0, 128, %s19_s18, [#allocation3]  }
  0x22   :  { %s325_s12 = smov [#allocation7]   ;;  %s273_s16 = scalar_lea.hbm %s414_s2, 1024 }
  0x23   :  { %s37_s13 = sshll.u32 %s325_s12, 4  ;;  %p274_p2 = scmp.ne.s32.totalorder %s414_s2, %s273_s16  ;;  %s38_s13 = int_to_ptr.vmem [resolvable:$true] %s37_s13 }
  0x24   :  { %p277_p3 = scmp.lt.u32.totalorder %s273_s16, %s414_s2 }
  0x26   :  { %p279_p4 = pnand %p277_p3, %p274_p2 }
  0x28   :  { %282 = shalt.err (!%p279_p4)
}
  0x29   :  { %s283_s22 = scalar_lea.vmem %s38_s13, 1024  ;;  %p288_p6 = scmp.lt.s32.totalorder %s38_s13, %s38_s13 }
  0x2a   :  { %p284_p5 = scmp.ne.s32.totalorder %s38_s13, %s283_s22  ;;  %p289_p7 = scmp.lt.s32.totalorder %s283_s22, %s283_s22 }
  0x2c   :  { %p290_p8 = por %p289_p7, %p288_p6 }
  0x2e   :  { %p291_p9 = pnand %p290_p8, %p284_p5 }
  0x30   :  { %294 = shalt.err (!%p291_p9)
}
  0x31   :  { %s326_s0 = smov 128   ;;  %s327_s18 = smov 8  }
  0x32   :  { %43 = dma.hbm_to_vmem [thread:$0]  %s414_s2, 1024, %s38_s13, [#allocation6], %s326_s0, %s326_s0, %s327_s18  }
  0x33   :  { %317 = dma.done.wait [#allocation3], 128  }
  0x34   :  { %318 = vsyncadd [#allocation3], 4294967168 }
  0x35   :  { %319 = dma.done.wait [#allocation6], 1152  }
  0x36   :  { %320 = vsyncadd [#allocation6], 4294966144  ;;  %v328_v0 = vmov 0.0|0.0   ;;  %vm329_vm0 = vmmov 0   ;;  %v330_v1 = vmov 0.0   ;;  %v56_v2 = vld [vmem:[#allocation5] sm:$0xff] }
  0x37   :  { %206 = vmatprep.subr.bf16.mxu0 %v328_v0  ;;  %203 = vmatprep.mubr.msk.f32.mxu0 %vm329_vm0, %v330_v1  ;;  %v63_v3 = vld [vmem:[#allocation7] sm:$0xff]  ;;  %v64_v4 = vld [vmem:[#allocation7 + $0x8] sm:$0xff]  ;;  %s331_s25 = smov 32   ;;  %v65_v6 = vld [vmem:[#allocation7 + $0x10] sm:$0xff]  ;;  %vm61_vm1 = vcmask 261120   ;;  %vm78_vm2 = vcmask 523264  }
  0x38   :  { %58 = vrot.lane.b32.xlu0 %v56_v2, %s331_s25  ;;  %v207_v5 = vpack.c.bf16 %v64_v4, %v63_v3  ;;  %v66_v7 = vld [vmem:[#allocation7 + $0x18] sm:$0xff]  ;;  %v67_v9 = vld [vmem:[#allocation7 + $0x20] sm:$0xff]  ;;  %v68_v10 = vld [vmem:[#allocation7 + $0x28] sm:$0xff]  ;;  %s332_s27 = smov 96   ;;  %s333_s28 = smov [#allocation8]  }
  0x39   :  { %v210_v8 = vpack.c.bf16 %v66_v7, %v65_v6  ;;  %v213_v11 = vpack.c.bf16 %v68_v10, %v67_v9  ;;  %v69_v12 = vld [vmem:[#allocation7 + $0x30] sm:$0xff]  ;;  %v70_v13 = vld [vmem:[#allocation7 + $0x38] sm:$0xff]  ;;  %s166_s29 = sshll.u32 %s333_s28, 4  ;;  %s167_s29 = int_to_ptr.vmem [resolvable:$true] %s166_s29 }
  0x3a   :  { %208 = vmatpush3.bf16.msra.mxu0 %v207_v5  ;;  %v216_v14 = vpack.c.bf16 %v70_v13, %v69_v12  ;;  %v55_v15 = vld [vmem:[#allocation2] sm:$0xff]  ;;  %s295_s30 = scalar_lea.vmem %s167_s29, 128  ;;  %p300_p11 = scmp.lt.s32.totalorder %s167_s29, %s167_s29 }
  0x3b   :  { %209 = vmatprep.subr.bf16.mxu0 %v328_v0  ;;  %v176_v18 = vld [vmem:[%s415_s3] ss:$0 sm:$0xff]  ;;  %p296_p10 = scmp.ne.s32.totalorder %s167_s29, %s295_s30  ;;  %p301_p12 = scmp.lt.s32.totalorder %s295_s30, %s295_s30 }
  0x3d   :  { %p302_p13 = por %p301_p12, %p300_p11 }
  0x3e   :  { %211 = vmatpush3.bf16.msra.mxu0 %v210_v8 }
  0x3f   :  { %212 = vmatprep.subr.bf16.mxu0 %v328_v0  ;;  %p303_p0 = pnand %p302_p13, %p296_p10 }
  0x42   :  { %214 = vmatpush3.bf16.msra.mxu0 %v213_v11 }
  0x43   :  { %215 = vmatprep.subr.bf16.mxu0 %v328_v0 }
  0x46   :  { %217 = vmatpush3.bf16.msra.mxu0 %v216_v14 }
  0xaa   :  { %v59_v16 = vpop.permute.xlu0 %58 }
  0xab   :  { %v62_v17 = vsel %vm61_vm1, %v55_v15, %v59_v16 }
  0xac   :  { %204 = vmatmul.mubr.msk.f32.vlgmr.msra.gmra.mrb[0].mxu0 %vm78_vm2, %v62_v17 }
 0x17f   :  { %v148_v19 = vpop.f32.mrb[0].mxu0 }
 0x180   :  { %v149_v20 = vadd.f32 %v176_v18, %v148_v19  ;;  %v205_v21 = vpop.f32.mrb[1].mxu0 }
 0x182   :  { %v152_v22 = vmax.f32 %v149_v20, 0.0 }
 0x184   :  { %155 = vrot.lane.b32.xlu0 %v152_v22, %s332_s27  ;;  %v153_v23 = vadd.f32 %v152_v22, %v55_v15 }
 0x1f6   :  { %v156_v24 = vpop.permute.xlu0 %155 }
 0x1f7   :  { %v158_v25 = vadd.f32 %v156_v24, %v153_v23 }
 0x1f9   :  { %159 = vst.msk [vmem:[#allocation8] sm:$0xff] %vm61_vm1, %v158_v25 }
 0x1fa   :  { %306 = shalt.err (!%p303_p0)
}
 0x1fb   :  { %s307_s6 = scalar_lea.hbm %s416_s4, 128 }
 0x1fc   :  { %p308_p1 = scmp.ne.s32.totalorder %s416_s4, %s307_s6  ;;  %p311_p2 = scmp.lt.u32.totalorder %s307_s6, %s416_s4 }
 0x1fe   :  { %p313_p3 = pnand %p311_p2, %p308_p1 }
 0x200   :  { %316 = shalt.err (!%p313_p3)
}
 0x201   :  { %169 = dma.vmem_to_hbm [thread:$0]  %s167_s29, 128, %s416_s4, [#allocation4]  }
 0x202   :  { %321 = dma.done.wait [#allocation4], 128  }
 0x203   :  { %322 = vsyncadd [#allocation4], 4294967168 }
 0x204   :  { %173 = vsyncpa [#allocation3], 1 }
 0x205   :  { %174 = vsyncpa [#allocation6], 1 }
 0x206   :  { %175 = vsyncpa [#allocation4], 1 }

</bundles_post_ra>
